<compile_context>
chip_gen: v7x
topology: tpu7x:2x2x1
jax: 0.10.0
libtpu: 0.0.40
codegen_flags: <defaults>
</compile_context>

<pallas_src>
import functools

import jax
import jax.numpy as jnp
from jax.experimental import pallas as pl
from jax.experimental.pallas import tpu as pltpu


# ----------------------------------------------------------------------------
# Pallas kernel
# ----------------------------------------------------------------------------
def _make_kernel(B, L, num_blocks, y_range):
    eps = 1e-5
    inv_bl = 1.0 / float(B * L)
    inv_b = 1.0 / float(B)
    bf16 = jnp.bfloat16

    def kernel(x_ref, p_ref, wc1_ref, a1_ref, bw_ref, bg_ref, bb_ref,
               wf1_ref, af1_ref, wf2_ref, bf2_ref, out_ref):
        P = p_ref[...]                                   # (N, N) channel-match proj.
        N = P.shape[1]

        def mm(a, w):                                    # bf16 MXU, f32 accumulate
            return jnp.dot(a.astype(bf16), w, preferred_element_type=jnp.float32)

        def bn_channels(y, gamma, beta):
            # BatchNorm1d (training-mode batch stats, biased var) over (B, L) per
            # channel on a lane-dense (B, N) slab.  Both statistics are computed
            # independently and pushed through ONE f32 dot against P (reduce over
            # matching columns + broadcast back).  var = E[y^2] - mean^2 keeps the
            # mean->var chain short; sums stay f32 (cancellation-safe at this scale).
            ssum = jnp.sum(y, axis=0, keepdims=True)                 # (1, N)
            ssq = jnp.sum(y * y, axis=0, keepdims=True)              # (1, N)
            row0 = jax.lax.broadcasted_iota(jnp.int32, (2, N), 0) == 0
            stats = jnp.where(row0, ssum, ssq)                       # (2, N) fused slab
            s = jnp.dot(stats, P, preferred_element_type=jnp.float32) * inv_bl
            mean = s[0:1]
            var = s[1:2] - mean * mean
            return (y - mean) * (gamma * jax.lax.rsqrt(var + eps)) + beta

        def conv_bn(h, w, gamma, beta, relu):
            # Conv bias intentionally omitted: a per-channel constant added right
            # before BatchNorm is exactly cancelled by the BN mean subtraction.
            y = bn_channels(mm(h, w), gamma, beta)
            return jnp.maximum(y, 0.0) if relu else y

        # conv1 + bn1 + relu  -> (B, N)
        A1 = a1_ref[...]                                 # (2, N): gamma, beta (tiled)
        h = conv_bn(x_ref[...], wc1_ref[...], A1[0:1], A1[1:2], True)

        # Residual blocks: statically unrolled (num_blocks is a closure constant),
        # so all weight/aux indexing is static.
        # TODO(synk): switch to lax.fori_loop if num_blocks grows enough that the
        # unrolled live ranges start spilling vregs.
        for i in range(num_blocks):
            j = 2 * i
            o = conv_bn(h, bw_ref[j],
                        bg_ref[pl.ds(j, 1), :], bb_ref[pl.ds(j, 1), :], True)
            o = conv_bn(o, bw_ref[j + 1],
                        bg_ref[pl.ds(j + 1, 1), :], bb_ref[pl.ds(j + 1, 1), :], False)
            h = jnp.maximum(o + h, 0.0)

        # fc1 (bias dropped: cancelled by bn2 mean) + bn2 over batch + relu
        AF1 = af1_ref[...]                               # (2, 256): gamma, beta
        z = mm(h, wf1_ref[...])
        zm = jnp.sum(z, axis=0, keepdims=True) * inv_b
        z2 = jnp.sum(z * z, axis=0, keepdims=True) * inv_b
        var2 = z2 - zm * zm
        z = jnp.maximum((z - zm) * (AF1[0:1] * jax.lax.rsqrt(var2 + eps)) + AF1[1:2],
                        0.0)

        # fc2 (output lanes zero-padded to 128 in the wrapper -> unmasked store)
        y = mm(z, wf2_ref[...]) + bf2_ref[...]
        if y_range:                                      # static python branch
            y = y_range[0] + (y_range[1] - y_range[0]) * jax.nn.sigmoid(y)
        out_ref[...] = y.astype(out_ref.dtype)

    return kernel


# ----------------------------------------------------------------------------
# One-time parameter preprocessing (hoisted out of the per-call path)
# ----------------------------------------------------------------------------
def prepare_params(params, *, input_dim, num_filters, num_blocks):
    L, F = input_dim, num_filters
    N = L * F
    f32, bf16 = jnp.float32, jnp.bfloat16
    hidden = params['fc1_w'].shape[0]
    O = params['fc2_w'].shape[0]

    def band(w):
        # (Cout, Cin, 3) -> block-banded (L*Cin, L*Cout) so the 'same' conv is one
        # matmul: W[li*Cin+ci, lo*Cout+co] = w[co, ci, li-lo+1] for |li-lo| <= 1.
        Cout, Cin, _ = w.shape
        li = jnp.arange(L)[:, None]
        lo = jnp.arange(L)[None, :]
        t = li - lo + 1
        mask = (t >= 0) & (t <= 2)
        taps = jnp.transpose(w, (1, 0, 2)).astype(f32)            # (Cin, Cout, 3)
        W4 = taps[:, :, jnp.clip(t, 0, 2)]                        # (Cin, Cout, L, L)
        W4 = jnp.transpose(W4, (2, 0, 3, 1)) * mask[:, None, :, None].astype(f32)
        return W4.reshape(L * Cin, L * Cout)

    def tiled(v):
        # per-channel (C,) -> (1, L*C) matching column order n = l*C + c
        return jnp.tile(v.astype(f32).reshape(1, -1), (1, L))

    # Channel-match projection matrix for the BN reduce+broadcast in the flat domain.
    ch = jnp.arange(N) % F
    P = (ch[:, None] == ch[None, :]).astype(f32)

    wc1 = band(params['conv1_w']).astype(bf16)                            # (L, N)
    a1 = jnp.concatenate([tiled(params['bn1_g']), tiled(params['bn1_b'])], axis=0)

    # Conv biases / fc1 bias are NOT packed: they are cancelled by the BatchNorm
    # mean subtraction that immediately follows each of them.
    bw, bg, bb = [], [], []
    for blk in params['blocks']:
        for cw, g, b in ((blk['c1_w'], blk['bn1_g'], blk['bn1_b']),
                         (blk['c2_w'], blk['bn2_g'], blk['bn2_b'])):
            bw.append(band(cw))
            bg.append(tiled(g)[0])
            bb.append(tiled(b)[0])
    bw = jnp.stack(bw).astype(bf16)                                        # (2nb, N, N)
    bg = jnp.stack(bg)                                                     # (2nb, N)
    bb = jnp.stack(bb)                                                     # (2nb, N)

    # fc1 weight: PyTorch flattening has columns (c*L + l); kernel uses (l*F + c).
    w1p = (jnp.transpose(params['fc1_w']).reshape(F, L, hidden)
           .transpose(1, 0, 2).reshape(N, hidden)).astype(bf16)            # (N, 256)
    af1 = jnp.stack([params['bn2_g'].astype(f32),
                     params['bn2_b'].astype(f32)])                         # (2, 256)

    # fc2: zero-pad output lanes to a multiple of 128 for an unmasked store.
    o_pad = max(128, -(-O // 128) * 128)
    wf2 = jnp.zeros((hidden, o_pad), f32)
    wf2 = wf2.at[:, :O].set(jnp.transpose(params['fc2_w']).astype(f32)).astype(bf16)
    bf2 = jnp.zeros((1, o_pad), f32).at[:, :O].set(
        params['fc2_b'].astype(f32).reshape(1, -1))

    return (P, wc1, a1, bw, bg, bb, w1p, af1, wf2, bf2)


# ----------------------------------------------------------------------------
# Forward: reshape(x) + one pallas_call + output lane slice
# ----------------------------------------------------------------------------
@functools.partial(jax.jit, static_argnames=("input_dim", "output_dim",
                                             "num_filters", "num_blocks", "y_range"))
def resnet_forward(x, prepped, *, input_dim, output_dim, num_filters,
                   num_blocks, y_range=()):
    assert num_blocks >= 1
    B = x.shape[0]
    L = input_dim
    o_pad = prepped[-2].shape[1]
    x2d = x.reshape(B, L).astype(jnp.float32)            # x.view(-1, 1, L), Cin = 1

    vmem = pl.BlockSpec(memory_space=pltpu.MemorySpace.VMEM)
    kernel = _make_kernel(B, L, num_blocks, y_range)
    out = pl.pallas_call(
        kernel,
        out_shape=jax.ShapeDtypeStruct((B, o_pad), jnp.float32),
        in_specs=[vmem] * (1 + len(prepped)),
        out_specs=vmem,
        compiler_params=pltpu.CompilerParams(vmem_limit_bytes=64 * 1024 * 1024),
    )(x2d, *prepped)
    return out[:, :output_dim]


# ----------------------------------------------------------------------------
# Pure-JAX reference (mirrors PyTorch NCL semantics, biases included)
# ----------------------------------------------------------------------------
def resnet_reference(x, params, *, input_dim, num_filters, num_blocks, y_range=()):
    B, L = x.shape[0], input_dim
    eps = 1e-5
    hp = jax.lax.Precision.HIGHEST

    def conv1d(h, w, b):  # h: (B, Cin, L), w: (Cout, Cin, 3)
        hpad = jnp.pad(h, ((0, 0), (0, 0), (1, 1)))
        out = jnp.zeros((B, w.shape[0], L), jnp.float32)
        for t in range(3):
            out = out + jnp.einsum('oi,bil->bol', w[:, :, t],
                                   hpad[:, :, t:t + L], precision=hp)
        return out + b[None, :, None]

    def bn(h, g, bta, axes):
        m = h.mean(axis=axes, keepdims=True)
        v = ((h - m) ** 2).mean(axis=axes, keepdims=True)
        gs = g.reshape((1, -1) + (1,) * (h.ndim - 2))
        bs = bta.reshape((1, -1) + (1,) * (h.ndim - 2))
        return (h - m) / jnp.sqrt(v + eps) * gs + bs

    h = x.reshape(B, 1, L)
    h = jax.nn.relu(bn(conv1d(h, params['conv1_w'], params['conv1_b']),
                       params['bn1_g'], params['bn1_b'], (0, 2)))
    for blk in params['blocks']:
        idn = h
        o = jax.nn.relu(bn(conv1d(h, blk['c1_w'], blk['c1_b']),
                           blk['bn1_g'], blk['bn1_b'], (0, 2)))
        o = bn(conv1d(o, blk['c2_w'], blk['c2_b']),
               blk['bn2_g'], blk['bn2_b'], (0, 2))
        h = jax.nn.relu(o + idn)
    flat = h.reshape(B, num_filters * L)
    z = jnp.dot(flat, params['fc1_w'].T, precision=hp) + params['fc1_b']
    z = jax.nn.relu(bn(z, params['bn2_g'], params['bn2_b'], (0,)))
    y = jnp.dot(z, params['fc2_w'].T, precision=hp) + params['fc2_b']
    if y_range:
        y = y_range[0] + (y_range[1] - y_range[0]) * jax.nn.sigmoid(y)
    return y


# ----------------------------------------------------------------------------
# Deterministic parameter init (PyTorch __init__ shapes, synthetic values)
# ----------------------------------------------------------------------------
def init_params(key, input_dim, output_dim, num_filters, num_blocks, hidden=256):
    L, F, O = input_dim, num_filters, output_dim
    keys = iter(list(jax.random.split(key, 64)))

    def w(shape, scale=0.1):
        return scale * jax.random.normal(next(keys), shape, jnp.float32)

    def bn_pair(c):
        g = 1.0 + 0.1 * jax.random.normal(next(keys), (c,), jnp.float32)
        b = 0.1 * jax.random.normal(next(keys), (c,), jnp.float32)
        return g, b

    p = {'conv1_w': w((F, 1, 3)), 'conv1_b': w((F,))}
    p['bn1_g'], p['bn1_b'] = bn_pair(F)
    blocks = []
    for _ in range(num_blocks):
        blk = {'c1_w': w((F, F, 3)), 'c1_b': w((F,))}
        blk['bn1_g'], blk['bn1_b'] = bn_pair(F)
        blk['c2_w'] = w((F, F, 3))
        blk['c2_b'] = w((F,))
        blk['bn2_g'], blk['bn2_b'] = bn_pair(F)
        blocks.append(blk)
    p['blocks'] = blocks
    p['fc1_w'] = w((hidden, F * L))
    p['fc1_b'] = w((hidden,))
    p['bn2_g'], p['bn2_b'] = bn_pair(hidden)
    p['fc2_w'] = w((O, hidden))
    p['fc2_b'] = w((O,))
    return p


if __name__ == "__main__":
    B, INPUT_DIM, OUTPUT_DIM, NUM_FILTERS, NUM_BLOCKS = 4, 16, 4, 8, 1
    key = jax.random.PRNGKey(0)
    kp, kx = jax.random.split(key)
    params = init_params(kp, INPUT_DIM, OUTPUT_DIM, NUM_FILTERS, NUM_BLOCKS)
    x = jax.random.normal(kx, (B, INPUT_DIM), jnp.float32)

    # One-time preprocessing (hot path is just resnet_forward below).
    prepped = jax.block_until_ready(
        prepare_params(params, input_dim=INPUT_DIM, num_filters=NUM_FILTERS,
                       num_blocks=NUM_BLOCKS))

    out = resnet_forward(x, prepped, input_dim=INPUT_DIM, output_dim=OUTPUT_DIM,
                         num_filters=NUM_FILTERS, num_blocks=NUM_BLOCKS, y_range=())
    out = jax.block_until_ready(out)

    ref = resnet_reference(x, params, input_dim=INPUT_DIM,
                           num_filters=NUM_FILTERS, num_blocks=NUM_BLOCKS, y_range=())

    assert out.shape == (B, OUTPUT_DIM)
    assert bool(jnp.all(jnp.isfinite(out)))
    # bf16 MXU operands (f32 accumulation) vs f32 HIGHEST-precision reference.
    assert bool(jnp.allclose(out, ref, rtol=5e-2, atol=5e-2))
    print("KERNEL_OK")
</pallas_src>

<mosaic_0001>
module attributes {stable_mosaic.version = 11 : i64} {
  func.func @kernel(%arg0: memref<4x16xf32, #tpu.memory_space<vmem>>, %arg1: memref<128x128xf32, #tpu.memory_space<vmem>>, %arg2: memref<16x128xbf16, #tpu.memory_space<vmem>>, %arg3: memref<2x128xf32, #tpu.memory_space<vmem>>, %arg4: memref<2x128x128xbf16, #tpu.memory_space<vmem>>, %arg5: memref<2x128xf32, #tpu.memory_space<vmem>>, %arg6: memref<2x128xf32, #tpu.memory_space<vmem>>, %arg7: memref<128x256xbf16, #tpu.memory_space<vmem>>, %arg8: memref<2x256xf32, #tpu.memory_space<vmem>>, %arg9: memref<256x128xbf16, #tpu.memory_space<vmem>>, %arg10: memref<1x128xf32, #tpu.memory_space<vmem>>, %arg11: memref<4x128xf32, #tpu.memory_space<vmem>>) attributes {dimension_semantics = [], scalar_prefetch = 0 : i64, scratch_operands = 0 : i64, tpu.core_type = #tpu.core_type<tc>} {
    %c0 = arith.constant 0 : index
    %c0_0 = arith.constant 0 : index
    %0 = vector.load %arg1[%c0, %c0_0] : memref<128x128xf32, #tpu.memory_space<vmem>>, vector<128x128xf32>
    %c0_1 = arith.constant 0 : index
    %c0_2 = arith.constant 0 : index
    %1 = vector.load %arg3[%c0_1, %c0_2] : memref<2x128xf32, #tpu.memory_space<vmem>>, vector<2x128xf32>
    %c0_3 = arith.constant 0 : index
    %c0_4 = arith.constant 0 : index
    %2 = vector.load %arg0[%c0_3, %c0_4] : memref<4x16xf32, #tpu.memory_space<vmem>>, vector<4x16xf32>
    %c0_5 = arith.constant 0 : index
    %c0_6 = arith.constant 0 : index
    %3 = vector.load %arg2[%c0_5, %c0_6] : memref<16x128xbf16, #tpu.memory_space<vmem>>, vector<16x128xbf16>
    %4 = vector.extract_strided_slice %1 {offsets = [0, 0], sizes = [1, 128], strides = [1, 1]} : vector<2x128xf32> to vector<1x128xf32>
    %5 = vector.extract_strided_slice %1 {offsets = [1, 0], sizes = [1, 128], strides = [1, 1]} : vector<2x128xf32> to vector<1x128xf32>
    %6 = arith.truncf %2 : vector<4x16xf32> to vector<4x16xbf16>
    %cst = arith.constant dense<0.000000e+00> : vector<4x128xf32>
    %7 = tpu.matmul %6, %3, %cst {dimension_numbers = #tpu.dot_dimension_numbers<[1], [0], [0], [1], [0, 0, 1, 1], [], []>} : vector<4x16xbf16>, vector<16x128xbf16>, vector<4x128xf32> -> vector<4x128xf32>
    %cst_7 = arith.constant dense<0.000000e+00> : vector<128xf32>
    %8 = vector.multi_reduction <add>, %7, %cst_7 [0] : vector<4x128xf32> to vector<128xf32>
    %9 = vector.shape_cast %8 : vector<128xf32> to vector<1x128xf32>
    %10 = arith.mulf %7, %7 : vector<4x128xf32>
    %cst_8 = arith.constant dense<0.000000e+00> : vector<128xf32>
    %11 = vector.multi_reduction <add>, %10, %cst_8 [0] : vector<4x128xf32> to vector<128xf32>
    %12 = vector.shape_cast %11 : vector<128xf32> to vector<1x128xf32>
    %13 = tpu.iota {dimensions = array<i32: 0>} : vector<2x128xi32>
    %c0_i32 = arith.constant 0 : i32
    %14 = vector.broadcast %c0_i32 : i32 to vector<2x128xi32>
    %15 = arith.cmpi eq, %13, %14 : vector<2x128xi32>
    %16 = vector.shape_cast %9 : vector<1x128xf32> to vector<1x128xf32>
    %17 = vector.broadcast %16 : vector<1x128xf32> to vector<2x128xf32>
    %18 = vector.shape_cast %12 : vector<1x128xf32> to vector<1x128xf32>
    %19 = vector.broadcast %18 : vector<1x128xf32> to vector<2x128xf32>
    %20 = arith.select %15, %17, %19 : vector<2x128xi1>, vector<2x128xf32>
    %cst_9 = arith.constant dense<0.000000e+00> : vector<2x128xf32>
    %21 = tpu.matmul %20, %0, %cst_9 {dimension_numbers = #tpu.dot_dimension_numbers<[1], [0], [0], [1], [0, 0, 1, 1], [], []>} : vector<2x128xf32>, vector<128x128xf32>, vector<2x128xf32> -> vector<2x128xf32>
    %cst_10 = arith.constant 1.562500e-02 : f32
    %22 = vector.broadcast %cst_10 : f32 to vector<2x128xf32>
    %23 = arith.mulf %21, %22 : vector<2x128xf32>
    %24 = vector.extract_strided_slice %23 {offsets = [0, 0], sizes = [1, 128], strides = [1, 1]} : vector<2x128xf32> to vector<1x128xf32>
    %25 = vector.extract_strided_slice %23 {offsets = [1, 0], sizes = [1, 128], strides = [1, 1]} : vector<2x128xf32> to vector<1x128xf32>
    %26 = arith.mulf %24, %24 : vector<1x128xf32>
    %27 = arith.subf %25, %26 : vector<1x128xf32>
    %28 = vector.broadcast %24 : vector<1x128xf32> to vector<4x128xf32>
    %29 = arith.subf %7, %28 : vector<4x128xf32>
    %cst_11 = arith.constant 9.99999974E-6 : f32
    %30 = vector.broadcast %cst_11 : f32 to vector<1x128xf32>
    %31 = arith.addf %27, %30 : vector<1x128xf32>
    %32 = math.rsqrt %31 : vector<1x128xf32>
    %33 = arith.mulf %4, %32 : vector<1x128xf32>
    %34 = vector.broadcast %33 : vector<1x128xf32> to vector<4x128xf32>
    %35 = arith.mulf %29, %34 : vector<4x128xf32>
    %36 = vector.broadcast %5 : vector<1x128xf32> to vector<4x128xf32>
    %37 = arith.addf %35, %36 : vector<4x128xf32>
    %cst_12 = arith.constant 0.000000e+00 : f32
    %38 = vector.broadcast %cst_12 : f32 to vector<4x128xf32>
    %39 = arith.maximumf %37, %38 : vector<4x128xf32>
    %c0_13 = arith.constant 0 : index
    %c0_14 = arith.constant 0 : index
    %c0_15 = arith.constant 0 : index
    %40 = vector.load %arg4[%c0_13, %c0_14, %c0_15] : memref<2x128x128xbf16, #tpu.memory_space<vmem>>, vector<1x128x128xbf16>
    %41 = vector.shape_cast %40 : vector<1x128x128xbf16> to vector<128x128xbf16>
    %c0_16 = arith.constant 0 : index
    %c0_17 = arith.constant 0 : index
    %42 = vector.load %arg5[%c0_16, %c0_17] : memref<2x128xf32, #tpu.memory_space<vmem>>, vector<1x128xf32>
    %c0_18 = arith.constant 0 : index
    %c0_19 = arith.constant 0 : index
    %43 = vector.load %arg6[%c0_18, %c0_19] : memref<2x128xf32, #tpu.memory_space<vmem>>, vector<1x128xf32>
    %44 = arith.truncf %39 : vector<4x128xf32> to vector<4x128xbf16>
    %cst_20 = arith.constant dense<0.000000e+00> : vector<4x128xf32>
    %45 = tpu.matmul %44, %41, %cst_20 {dimension_numbers = #tpu.dot_dimension_numbers<[1], [0], [0], [1], [0, 0, 1, 1], [], []>} : vector<4x128xbf16>, vector<128x128xbf16>, vector<4x128xf32> -> vector<4x128xf32>
    %cst_21 = arith.constant dense<0.000000e+00> : vector<128xf32>
    %46 = vector.multi_reduction <add>, %45, %cst_21 [0] : vector<4x128xf32> to vector<128xf32>
    %47 = vector.shape_cast %46 : vector<128xf32> to vector<1x128xf32>
    %48 = arith.mulf %45, %45 : vector<4x128xf32>
    %cst_22 = arith.constant dense<0.000000e+00> : vector<128xf32>
    %49 = vector.multi_reduction <add>, %48, %cst_22 [0] : vector<4x128xf32> to vector<128xf32>
    %50 = vector.shape_cast %49 : vector<128xf32> to vector<1x128xf32>
    %51 = tpu.iota {dimensions = array<i32: 0>} : vector<2x128xi32>
    %c0_i32_23 = arith.constant 0 : i32
    %52 = vector.broadcast %c0_i32_23 : i32 to vector<2x128xi32>
    %53 = arith.cmpi eq, %51, %52 : vector<2x128xi32>
    %54 = vector.shape_cast %47 : vector<1x128xf32> to vector<1x128xf32>
    %55 = vector.broadcast %54 : vector<1x128xf32> to vector<2x128xf32>
    %56 = vector.shape_cast %50 : vector<1x128xf32> to vector<1x128xf32>
    %57 = vector.broadcast %56 : vector<1x128xf32> to vector<2x128xf32>
    %58 = arith.select %53, %55, %57 : vector<2x128xi1>, vector<2x128xf32>
    %cst_24 = arith.constant dense<0.000000e+00> : vector<2x128xf32>
    %59 = tpu.matmul %58, %0, %cst_24 {dimension_numbers = #tpu.dot_dimension_numbers<[1], [0], [0], [1], [0, 0, 1, 1], [], []>} : vector<2x128xf32>, vector<128x128xf32>, vector<2x128xf32> -> vector<2x128xf32>
    %cst_25 = arith.constant 1.562500e-02 : f32
    %60 = vector.broadcast %cst_25 : f32 to vector<2x128xf32>
    %61 = arith.mulf %59, %60 : vector<2x128xf32>
    %62 = vector.extract_strided_slice %61 {offsets = [0, 0], sizes = [1, 128], strides = [1, 1]} : vector<2x128xf32> to vector<1x128xf32>
    %63 = vector.extract_strided_slice %61 {offsets = [1, 0], sizes = [1, 128], strides = [1, 1]} : vector<2x128xf32> to vector<1x128xf32>
    %64 = arith.mulf %62, %62 : vector<1x128xf32>
    %65 = arith.subf %63, %64 : vector<1x128xf32>
    %66 = vector.broadcast %62 : vector<1x128xf32> to vector<4x128xf32>
    %67 = arith.subf %45, %66 : vector<4x128xf32>
    %cst_26 = arith.constant 9.99999974E-6 : f32
    %68 = vector.broadcast %cst_26 : f32 to vector<1x128xf32>
    %69 = arith.addf %65, %68 : vector<1x128xf32>
    %70 = math.rsqrt %69 : vector<1x128xf32>
    %71 = arith.mulf %42, %70 : vector<1x128xf32>
    %72 = vector.broadcast %71 : vector<1x128xf32> to vector<4x128xf32>
    %73 = arith.mulf %67, %72 : vector<4x128xf32>
    %74 = vector.broadcast %43 : vector<1x128xf32> to vector<4x128xf32>
    %75 = arith.addf %73, %74 : vector<4x128xf32>
    %cst_27 = arith.constant 0.000000e+00 : f32
    %76 = vector.broadcast %cst_27 : f32 to vector<4x128xf32>
    %77 = arith.maximumf %75, %76 : vector<4x128xf32>
    %c1 = arith.constant 1 : index
    %c0_28 = arith.constant 0 : index
    %c0_29 = arith.constant 0 : index
    %78 = vector.load %arg4[%c1, %c0_28, %c0_29] : memref<2x128x128xbf16, #tpu.memory_space<vmem>>, vector<1x128x128xbf16>
    %79 = vector.shape_cast %78 : vector<1x128x128xbf16> to vector<128x128xbf16>
    %c1_30 = arith.constant 1 : index
    %c0_31 = arith.constant 0 : index
    %80 = vector.load %arg5[%c1_30, %c0_31] : memref<2x128xf32, #tpu.memory_space<vmem>>, vector<1x128xf32>
    %c1_32 = arith.constant 1 : index
    %c0_33 = arith.constant 0 : index
    %81 = vector.load %arg6[%c1_32, %c0_33] : memref<2x128xf32, #tpu.memory_space<vmem>>, vector<1x128xf32>
    %82 = arith.truncf %77 : vector<4x128xf32> to vector<4x128xbf16>
    %cst_34 = arith.constant dense<0.000000e+00> : vector<4x128xf32>
    %83 = tpu.matmul %82, %79, %cst_34 {dimension_numbers = #tpu.dot_dimension_numbers<[1], [0], [0], [1], [0, 0, 1, 1], [], []>} : vector<4x128xbf16>, vector<128x128xbf16>, vector<4x128xf32> -> vector<4x128xf32>
    %cst_35 = arith.constant dense<0.000000e+00> : vector<128xf32>
    %84 = vector.multi_reduction <add>, %83, %cst_35 [0] : vector<4x128xf32> to vector<128xf32>
    %85 = vector.shape_cast %84 : vector<128xf32> to vector<1x128xf32>
    %86 = arith.mulf %83, %83 : vector<4x128xf32>
    %cst_36 = arith.constant dense<0.000000e+00> : vector<128xf32>
    %87 = vector.multi_reduction <add>, %86, %cst_36 [0] : vector<4x128xf32> to vector<128xf32>
    %88 = vector.shape_cast %87 : vector<128xf32> to vector<1x128xf32>
    %89 = tpu.iota {dimensions = array<i32: 0>} : vector<2x128xi32>
    %c0_i32_37 = arith.constant 0 : i32
    %90 = vector.broadcast %c0_i32_37 : i32 to vector<2x128xi32>
    %91 = arith.cmpi eq, %89, %90 : vector<2x128xi32>
    %92 = vector.shape_cast %85 : vector<1x128xf32> to vector<1x128xf32>
    %93 = vector.broadcast %92 : vector<1x128xf32> to vector<2x128xf32>
    %94 = vector.shape_cast %88 : vector<1x128xf32> to vector<1x128xf32>
    %95 = vector.broadcast %94 : vector<1x128xf32> to vector<2x128xf32>
    %96 = arith.select %91, %93, %95 : vector<2x128xi1>, vector<2x128xf32>
    %cst_38 = arith.constant dense<0.000000e+00> : vector<2x128xf32>
    %97 = tpu.matmul %96, %0, %cst_38 {dimension_numbers = #tpu.dot_dimension_numbers<[1], [0], [0], [1], [0, 0, 1, 1], [], []>} : vector<2x128xf32>, vector<128x128xf32>, vector<2x128xf32> -> vector<2x128xf32>
    %cst_39 = arith.constant 1.562500e-02 : f32
    %98 = vector.broadcast %cst_39 : f32 to vector<2x128xf32>
    %99 = arith.mulf %97, %98 : vector<2x128xf32>
    %100 = vector.extract_strided_slice %99 {offsets = [0, 0], sizes = [1, 128], strides = [1, 1]} : vector<2x128xf32> to vector<1x128xf32>
    %101 = vector.extract_strided_slice %99 {offsets = [1, 0], sizes = [1, 128], strides = [1, 1]} : vector<2x128xf32> to vector<1x128xf32>
    %102 = arith.mulf %100, %100 : vector<1x128xf32>
    %103 = arith.subf %101, %102 : vector<1x128xf32>
    %104 = vector.broadcast %100 : vector<1x128xf32> to vector<4x128xf32>
    %105 = arith.subf %83, %104 : vector<4x128xf32>
    %cst_40 = arith.constant 9.99999974E-6 : f32
    %106 = vector.broadcast %cst_40 : f32 to vector<1x128xf32>
    %107 = arith.addf %103, %106 : vector<1x128xf32>
    %108 = math.rsqrt %107 : vector<1x128xf32>
    %109 = arith.mulf %80, %108 : vector<1x128xf32>
    %110 = vector.broadcast %109 : vector<1x128xf32> to vector<4x128xf32>
    %111 = arith.mulf %105, %110 : vector<4x128xf32>
    %112 = vector.broadcast %81 : vector<1x128xf32> to vector<4x128xf32>
    %113 = arith.addf %111, %112 : vector<4x128xf32>
    %114 = arith.addf %113, %39 : vector<4x128xf32>
    %cst_41 = arith.constant 0.000000e+00 : f32
    %115 = vector.broadcast %cst_41 : f32 to vector<4x128xf32>
    %116 = arith.maximumf %114, %115 : vector<4x128xf32>
    %c0_42 = arith.constant 0 : index
    %c0_43 = arith.constant 0 : index
    %117 = vector.load %arg8[%c0_42, %c0_43] : memref<2x256xf32, #tpu.memory_space<vmem>>, vector<2x256xf32>
    %c0_44 = arith.constant 0 : index
    %c0_45 = arith.constant 0 : index
    %118 = vector.load %arg7[%c0_44, %c0_45] : memref<128x256xbf16, #tpu.memory_space<vmem>>, vector<128x256xbf16>
    %119 = arith.truncf %116 : vector<4x128xf32> to vector<4x128xbf16>
    %cst_46 = arith.constant dense<0.000000e+00> : vector<4x256xf32>
    %120 = tpu.matmul %119, %118, %cst_46 {dimension_numbers = #tpu.dot_dimension_numbers<[1], [0], [0], [1], [0, 0, 1, 1], [], []>} : vector<4x128xbf16>, vector<128x256xbf16>, vector<4x256xf32> -> vector<4x256xf32>
    %cst_47 = arith.constant dense<0.000000e+00> : vector<256xf32>
    %121 = vector.multi_reduction <add>, %120, %cst_47 [0] : vector<4x256xf32> to vector<256xf32>
    %122 = vector.shape_cast %121 : vector<256xf32> to vector<1x256xf32>
    %cst_48 = arith.constant 2.500000e-01 : f32
    %123 = vector.broadcast %cst_48 : f32 to vector<1x256xf32>
    %124 = arith.mulf %122, %123 : vector<1x256xf32>
    %125 = arith.mulf %120, %120 : vector<4x256xf32>
    %cst_49 = arith.constant dense<0.000000e+00> : vector<256xf32>
    %126 = vector.multi_reduction <add>, %125, %cst_49 [0] : vector<4x256xf32> to vector<256xf32>
    %127 = vector.shape_cast %126 : vector<256xf32> to vector<1x256xf32>
    %cst_50 = arith.constant 2.500000e-01 : f32
    %128 = vector.broadcast %cst_50 : f32 to vector<1x256xf32>
    %129 = arith.mulf %127, %128 : vector<1x256xf32>
    %130 = arith.mulf %124, %124 : vector<1x256xf32>
    %131 = arith.subf %129, %130 : vector<1x256xf32>
    %132 = vector.broadcast %124 : vector<1x256xf32> to vector<4x256xf32>
    %133 = arith.subf %120, %132 : vector<4x256xf32>
    %134 = vector.extract_strided_slice %117 {offsets = [0, 0], sizes = [1, 256], strides = [1, 1]} : vector<2x256xf32> to vector<1x256xf32>
    %cst_51 = arith.constant 9.99999974E-6 : f32
    %135 = vector.broadcast %cst_51 : f32 to vector<1x256xf32>
    %136 = arith.addf %131, %135 : vector<1x256xf32>
    %137 = math.rsqrt %136 : vector<1x256xf32>
    %138 = arith.mulf %134, %137 : vector<1x256xf32>
    %139 = vector.broadcast %138 : vector<1x256xf32> to vector<4x256xf32>
    %140 = arith.mulf %133, %139 : vector<4x256xf32>
    %141 = vector.extract_strided_slice %117 {offsets = [1, 0], sizes = [1, 256], strides = [1, 1]} : vector<2x256xf32> to vector<1x256xf32>
    %142 = vector.broadcast %141 : vector<1x256xf32> to vector<4x256xf32>
    %143 = arith.addf %140, %142 : vector<4x256xf32>
    %cst_52 = arith.constant 0.000000e+00 : f32
    %144 = vector.broadcast %cst_52 : f32 to vector<4x256xf32>
    %145 = arith.maximumf %143, %144 : vector<4x256xf32>
    %c0_53 = arith.constant 0 : index
    %c0_54 = arith.constant 0 : index
    %146 = vector.load %arg9[%c0_53, %c0_54] : memref<256x128xbf16, #tpu.memory_space<vmem>>, vector<256x128xbf16>
    %147 = arith.truncf %145 : vector<4x256xf32> to vector<4x256xbf16>
    %cst_55 = arith.constant dense<0.000000e+00> : vector<4x128xf32>
    %148 = tpu.matmul %147, %146, %cst_55 {dimension_numbers = #tpu.dot_dimension_numbers<[1], [0], [0], [1], [0, 0, 1, 1], [], []>} : vector<4x256xbf16>, vector<256x128xbf16>, vector<4x128xf32> -> vector<4x128xf32>
    %c0_56 = arith.constant 0 : index
    %c0_57 = arith.constant 0 : index
    %149 = vector.load %arg10[%c0_56, %c0_57] : memref<1x128xf32, #tpu.memory_space<vmem>>, vector<1x128xf32>
    %150 = vector.broadcast %149 : vector<1x128xf32> to vector<4x128xf32>
    %151 = arith.addf %148, %150 : vector<4x128xf32>
    %c0_58 = arith.constant 0 : index
    %c0_59 = arith.constant 0 : index
    %152 = vector.load %arg11[%c0_58, %c0_59] : memref<4x128xf32, #tpu.memory_space<vmem>>, vector<4x128xf32>
    tpu.vector_store %arg11[%c0_58, %c0_59], %151 {strides = array<i32>} : memref<4x128xf32, #tpu.memory_space<vmem>>, vector<4x128xf32>,
    return
  }
}

</mosaic_0001>

<bundles_post_ra>
// kernel: resnet_forward.1
= control target key start
LH: loop header
LB: loop body
LE: loop exit
PB: predicated region body
PF: predicated region fallthrough
CT: control target
= control target key end

     0   :  { %16 = vsyncpa [#allocation3], 0  ;;  %s2392_s0 = inlined_call_operand.hbm [shape: f32[4,16], index: 0, kind: input, shape index: {}]   ;;  %s2393_s1 = inlined_call_operand.hbm [shape: f32[128,128], index: 1, kind: input, shape index: {}]   ;;  %s2394_s2 = inlined_call_operand.hbm [shape: bf16[16,128], index: 2, kind: input, shape index: {}]   ;;  %s2395_s3 = inlined_call_operand.hbm [shape: f32[2,128], index: 3, kind: input, shape index: {}]   ;;  %s2396_s4 = inlined_call_operand.hbm [shape: bf16[2,128,128], index: 4, kind: input, shape index: {}]   ;;  %s2397_s5 = inlined_call_operand.hbm [shape: f32[2,128], index: 5, kind: input, shape index: {}]   ;;  %s2398_s6 = inlined_call_operand.hbm [shape: f32[2,128], index: 6, kind: input, shape index: {}]   ;;  %s2399_s7 = inlined_call_operand.hbm [shape: bf16[128,256], index: 7, kind: input, shape index: {}]   ;;  %s2400_s8 = inlined_call_operand.hbm [shape: f32[2,256], index: 8, kind: input, shape index: {}]   ;;  %s2401_s9 = inlined_call_operand.hbm [shape: bf16[256,128], index: 9, kind: input, shape index: {}]   ;;  %s2402_s10 = inlined_call_operand.hbm [shape: f32[1,128], index: 10, kind: input, shape index: {}]   ;;  %s2403_s11 = inlined_call_operand.hbm [shape: f32[4,128], index: 11, kind: output, shape index: {}]  }
   0x1   :  { %17 = vsyncpa [#allocation6], 0 }
   0x2   :  { %18 = vsyncpa [#allocation9], 0 }
   0x3   :  { %19 = vsyncpa [#allocation12], 0 }
   0x4   :  { %20 = vsyncpa [#allocation15], 0 }
   0x5   :  { %21 = vsyncpa [#allocation18], 0 }
   0x6   :  { %22 = vsyncpa [#allocation4], 0  ;;  %s1982_s17 = smov [#allocation5]   ;;  %s1704_s21 = scalar_lea.hbm %s2393_s1, 2048 }
   0x7   :  { %s38_s18 = sshll.u32 %s1982_s17, 4  ;;  %p1705_p0 = scmp.ne.s32.totalorder %s2393_s1, %s1704_s21  ;;  %s39_s18 = int_to_ptr.vmem [resolvable:$true] %s38_s18 }
   0x8   :  { %p1708_p1 = scmp.lt.u32.totalorder %s1704_s21, %s2393_s1 }
   0xa   :  { %p1710_p2 = pnand %p1708_p1, %p1705_p0 }
   0xc   :  { %1713 = shalt.err (!%p1710_p2)
}
   0xd   :  { %s1714_s26 = scalar_lea.vmem %s39_s18, 2048  ;;  %p1719_p4 = scmp.lt.s32.totalorder %s39_s18, %s39_s18 }
   0xe   :  { %p1715_p3 = scmp.ne.s32.totalorder %s39_s18, %s1714_s26  ;;  %p1720_p5 = scmp.lt.s32.totalorder %s1714_s26, %s1714_s26 }
  0x10   :  { %p1721_p6 = por %p1720_p5, %p1719_p4 }
  0x12   :  { %p1722_p7 = pnand %p1721_p6, %p1715_p3 }
  0x14   :  { %1725 = shalt.err (!%p1722_p7)
}
  0x15   :  { %s1983_s27 = smov 128   ;;  %s1984_s28 = smov 8  }
  0x16   :  { %44 = dma.hbm_to_vmem [thread:$0]  %s2393_s1, 2048, %s39_s18, [#allocation6], %s1983_s27, %s1983_s27, %s1984_s28  }
  0x17   :  { %s1985_s12 = smov [#allocation8]   ;;  %s1986_s14 = smov [#allocation11]  }
  0x18   :  { %s63_s13 = sshll.u32 %s1985_s12, 4  ;;  %s85_s15 = sshll.u32 %s1986_s14, 4  ;;  %s64_s13 = int_to_ptr.vmem [resolvable:$true] %s63_s13  ;;  %s86_s15 = int_to_ptr.vmem [resolvable:$true] %s85_s15 }
  0x19   :  { %s1726_s19 = scalar_lea.hbm %s2395_s3, 32 }
  0x1a   :  { %p1727_p8 = scmp.ne.s32.totalorder %s2395_s3, %s1726_s19  ;;  %p1730_p9 = scmp.lt.u32.totalorder %s1726_s19, %s2395_s3 }
  0x1c   :  { %p1732_p10 = pnand %p1730_p9, %p1727_p8 }
  0x1e   :  { %1735 = shalt.err (!%p1732_p10)
}
  0x1f   :  { %s1736_s1 = scalar_lea.vmem %s64_s13, 32  ;;  %p1741_p12 = scmp.lt.s32.totalorder %s64_s13, %s64_s13 }
  0x20   :  { %p1737_p11 = scmp.ne.s32.totalorder %s64_s13, %s1736_s1  ;;  %p1742_p13 = scmp.lt.s32.totalorder %s1736_s1, %s1736_s1 }
  0x22   :  { %p1743_p0 = por %p1742_p13, %p1741_p12 }
  0x24   :  { %p1744_p1 = pnand %p1743_p0, %p1737_p11 }
  0x26   :  { %1747 = shalt.err (!%p1744_p1)
}
  0x27   :  { %66 = dma.hbm_to_vmem [thread:$0]  %s2395_s3, 32, %s64_s13, [#allocation9]  }
  0x28   :  { %s1748_s29 = scalar_lea.hbm %s2397_s5, 32 }
  0x29   :  { %p1749_p2 = scmp.ne.s32.totalorder %s2397_s5, %s1748_s29  ;;  %p1752_p3 = scmp.lt.u32.totalorder %s1748_s29, %s2397_s5 }
  0x2b   :  { %p1754_p4 = pnand %p1752_p3, %p1749_p2 }
  0x2d   :  { %1757 = shalt.err (!%p1754_p4)
}
  0x2e   :  { %s1758_s17 = scalar_lea.vmem %s86_s15, 32  ;;  %p1763_p6 = scmp.lt.s32.totalorder %s86_s15, %s86_s15 }
  0x2f   :  { %p1759_p5 = scmp.ne.s32.totalorder %s86_s15, %s1758_s17  ;;  %p1764_p7 = scmp.lt.s32.totalorder %s1758_s17, %s1758_s17 }
  0x31   :  { %p1765_p8 = por %p1764_p7, %p1763_p6 }
  0x33   :  { %p1766_p9 = pnand %p1765_p8, %p1759_p5 }
  0x35   :  { %1769 = shalt.err (!%p1766_p9)
}
  0x36   :  { %88 = dma.hbm_to_vmem [thread:$0]  %s2397_s5, 32, %s86_s15, [#allocation12]  }
  0x37   :  { %s1987_s19 = smov [#allocation14]   ;;  %s1770_s23 = scalar_lea.hbm %s2399_s7, 2048 }
  0x38   :  { %s104_s20 = sshll.u32 %s1987_s19, 4  ;;  %p1771_p10 = scmp.ne.s32.totalorder %s2399_s7, %s1770_s23  ;;  %s105_s20 = int_to_ptr.vmem [resolvable:$true] %s104_s20 }
  0x39   :  { %p1774_p11 = scmp.lt.u32.totalorder %s1770_s23, %s2399_s7 }
  0x3b   :  { %p1776_p12 = pnand %p1774_p11, %p1771_p10 }
  0x3d   :  { %1779 = shalt.err (!%p1776_p12)
}
  0x3e   :  { %s1780_s26 = scalar_lea.vmem %s105_s20, 2048  ;;  %p1785_p0 = scmp.lt.s32.totalorder %s105_s20, %s105_s20 }
  0x3f   :  { %p1781_p13 = scmp.ne.s32.totalorder %s105_s20, %s1780_s26  ;;  %p1786_p1 = scmp.lt.s32.totalorder %s1780_s26, %s1780_s26 }
  0x41   :  { %p1787_p2 = por %p1786_p1, %p1785_p0 }
  0x43   :  { %p1788_p3 = pnand %p1787_p2, %p1781_p13 }
  0x45   :  { %1791 = shalt.err (!%p1788_p3)
}
  0x46   :  { %110 = dma.hbm_to_vmem [thread:$0]  %s2399_s7, 2048, %s105_s20, [#allocation15], %s1983_s27, %s1983_s27, %s1984_s28  }
  0x47   :  { %s1988_s29 = smov [#allocation17]   ;;  %s1989_s12 = smov [#allocation2]  }
  0x48   :  { %s126_s30 = sshll.u32 %s1988_s29, 4  ;;  %s29_s14 = sshll.u32 %s1989_s12, 4  ;;  %s127_s30 = int_to_ptr.vmem [resolvable:$true] %s126_s30  ;;  %s30_s14 = int_to_ptr.vmem [resolvable:$true] %s29_s14 }
  0x49   :  { %s1792_s3 = scalar_lea.hbm %s2401_s9, 2048 }
  0x4a   :  { %p1793_p4 = scmp.ne.s32.totalorder %s2401_s9, %s1792_s3  ;;  %p1796_p5 = scmp.lt.u32.totalorder %s1792_s3, %s2401_s9 }
  0x4c   :  { %p1798_p6 = pnand %p1796_p5, %p1793_p4 }
  0x4e   :  { %1801 = shalt.err (!%p1798_p6)
}
  0x4f   :  { %s1802_s7 = scalar_lea.vmem %s127_s30, 2048  ;;  %p1807_p8 = scmp.lt.s32.totalorder %s127_s30, %s127_s30 }
  0x50   :  { %p1803_p7 = scmp.ne.s32.totalorder %s127_s30, %s1802_s7  ;;  %p1808_p9 = scmp.lt.s32.totalorder %s1802_s7, %s1802_s7 }
  0x52   :  { %p1809_p10 = por %p1808_p9, %p1807_p8 }
  0x54   :  { %p1810_p11 = pnand %p1809_p10, %p1803_p7 }
  0x56   :  { %1813 = shalt.err (!%p1810_p11)
}
  0x57   :  { %s1990_s27 = smov 64   ;;  %s1991_s28 = smov 4  }
  0x58   :  { %132 = dma.hbm_to_vmem [thread:$0]  %s2401_s9, 2048, %s127_s30, [#allocation18], %s1990_s27, %s1990_s27, %s1991_s28  }
  0x59   :  { %s1814_s24 = scalar_lea.hbm %s2392_s0, 64 }
  0x5a   :  { %p1815_p12 = scmp.ne.s32.totalorder %s2392_s0, %s1814_s24  ;;  %p1818_p13 = scmp.lt.u32.totalorder %s1814_s24, %s2392_s0 }
  0x5c   :  { %p1820_p0 = pnand %p1818_p13, %p1815_p12 }
  0x5e   :  { %1823 = shalt.err (!%p1820_p0)
}
  0x5f   :  { %s1824_s29 = scalar_lea.vmem %s30_s14, 64  ;;  %p1829_p2 = scmp.lt.s32.totalorder %s30_s14, %s30_s14 }
  0x60   :  { %p1825_p1 = scmp.ne.s32.totalorder %s30_s14, %s1824_s29  ;;  %p1830_p3 = scmp.lt.s32.totalorder %s1824_s29, %s1824_s29 }
  0x62   :  { %p1831_p4 = por %p1830_p3, %p1829_p2 }
  0x64   :  { %p1832_p5 = pnand %p1831_p4, %p1825_p1 }
  0x66   :  { %1835 = shalt.err (!%p1832_p5)
}
  0x67   :  { %32 = dma.hbm_to_vmem [thread:$0]  %s2392_s0, 64, %s30_s14, [#allocation3]  }
  0x68   :  { %s1992_s12 = smov [#allocation7]   ;;  %s1993_s17 = smov [#allocation10]  }
  0x69   :  { %s50_s16 = sshll.u32 %s1992_s12, 4  ;;  %s72_s3 = sshll.u32 %s1993_s17, 4  ;;  %s51_s16 = int_to_ptr.vmem [resolvable:$true] %s50_s16  ;;  %s2144_s3 = int_to_ptr.vmem [resolvable:$true] %s72_s3 }
  0x6a   :  { %s1836_s21 = scalar_lea.hbm %s2394_s2, 128 }
  0x6b   :  { %p1837_p6 = scmp.ne.s32.totalorder %s2394_s2, %s1836_s21  ;;  %p1840_p7 = scmp.lt.u32.totalorder %s1836_s21, %s2394_s2 }
  0x6d   :  { %p1842_p8 = pnand %p1840_p7, %p1837_p6 }
  0x6f   :  { %1845 = shalt.err (!%p1842_p8)
}
  0x70   :  { %s1846_s0 = scalar_lea.vmem %s51_s16, 128  ;;  %p1851_p10 = scmp.lt.s32.totalorder %s51_s16, %s51_s16 }
  0x71   :  { %p1847_p9 = scmp.ne.s32.totalorder %s51_s16, %s1846_s0  ;;  %p1852_p11 = scmp.lt.s32.totalorder %s1846_s0, %s1846_s0 }
  0x73   :  { %p1853_p12 = por %p1852_p11, %p1851_p10 }
  0x75   :  { %p1854_p13 = pnand %p1853_p12, %p1847_p9 }
  0x77   :  { %1857 = shalt.err (!%p1854_p13)
}
  0x78   :  { %56 = dma.hbm_to_vmem [thread:$0]  %s2394_s2, 128, %s51_s16, [#allocation6], %s1990_s27, %s1990_s27, %s1991_s28  }
  0x79   :  { %s1858_s25 = scalar_lea.hbm %s2396_s4, 2048 }
  0x7a   :  { %p1859_p0 = scmp.ne.s32.totalorder %s2396_s4, %s1858_s25  ;;  %p1862_p1 = scmp.lt.u32.totalorder %s1858_s25, %s2396_s4 }
  0x7c   :  { %p1864_p2 = pnand %p1862_p1, %p1859_p0 }
  0x7e   :  { %1867 = shalt.err (!%p1864_p2)
}
  0x7f   :  { %s1868_s9 = scalar_lea.vmem %s2144_s3, 2048  ;;  %p1873_p4 = scmp.lt.s32.totalorder %s2144_s3, %s2144_s3 }
  0x80   :  { %p1869_p3 = scmp.ne.s32.totalorder %s2144_s3, %s1868_s9  ;;  %p1874_p5 = scmp.lt.s32.totalorder %s1868_s9, %s1868_s9 }
  0x82   :  { %p1875_p6 = por %p1874_p5, %p1873_p4 }
  0x84   :  { %p1876_p7 = pnand %p1875_p6, %p1869_p3 }
  0x86   :  { %1879 = shalt.err (!%p1876_p7)
}
  0x87   :  { %78 = dma.hbm_to_vmem [thread:$0]  %s2396_s4, 2048, %s2144_s3, [#allocation9], %s1990_s27, %s1990_s27, %s1991_s28  }
  0x88   :  { %s1994_s12 = smov [#allocation13]   ;;  %s1995_s17 = smov [#allocation16]  }
  0x89   :  { %s95_s16 = sshll.u32 %s1994_s12, 4  ;;  %s117_s13 = sshll.u32 %s1995_s17, 4  ;;  %s96_s16 = int_to_ptr.vmem [resolvable:$true] %s95_s16  ;;  %s118_s13 = int_to_ptr.vmem [resolvable:$true] %s117_s13 }
  0x8a   :  { %s1880_s22 = scalar_lea.hbm %s2398_s6, 32 }
  0x8b   :  { %p1881_p8 = scmp.ne.s32.totalorder %s2398_s6, %s1880_s22  ;;  %p1884_p9 = scmp.lt.u32.totalorder %s1880_s22, %s2398_s6 }
  0x8d   :  { %p1886_p10 = pnand %p1884_p9, %p1881_p8 }
  0x8f   :  { %1889 = shalt.err (!%p1886_p10)
}
  0x90   :  { %s1890_s4 = scalar_lea.vmem %s96_s16, 32  ;;  %p1895_p12 = scmp.lt.s32.totalorder %s96_s16, %s96_s16 }
  0x91   :  { %p1891_p11 = scmp.ne.s32.totalorder %s96_s16, %s1890_s4  ;;  %p1896_p13 = scmp.lt.s32.totalorder %s1890_s4, %s1890_s4 }
  0x93   :  { %p1897_p0 = por %p1896_p13, %p1895_p12 }
  0x95   :  { %p1898_p1 = pnand %p1897_p0, %p1891_p11 }
  0x97   :  { %1901 = shalt.err (!%p1898_p1)
}
  0x98   :  { %98 = dma.hbm_to_vmem [thread:$0]  %s2398_s6, 32, %s96_s16, [#allocation12]  }
  0x99   :  { %s1902_s1 = scalar_lea.hbm %s2400_s8, 64 }
  0x9a   :  { %p1903_p2 = scmp.ne.s32.totalorder %s2400_s8, %s1902_s1  ;;  %p1906_p3 = scmp.lt.u32.totalorder %s1902_s1, %s2400_s8 }
  0x9c   :  { %p1908_p4 = pnand %p1906_p3, %p1903_p2 }
  0x9e   :  { %1911 = shalt.err (!%p1908_p4)
}
  0x9f   :  { %s1912_s5 = scalar_lea.vmem %s118_s13, 64  ;;  %p1917_p6 = scmp.lt.s32.totalorder %s118_s13, %s118_s13 }
  0xa0   :  { %p1913_p5 = scmp.ne.s32.totalorder %s118_s13, %s1912_s5  ;;  %p1918_p7 = scmp.lt.s32.totalorder %s1912_s5, %s1912_s5 }
  0xa2   :  { %p1919_p8 = por %p1918_p7, %p1917_p6 }
  0xa4   :  { %p1920_p9 = pnand %p1919_p8, %p1913_p5 }
  0xa6   :  { %1923 = shalt.err (!%p1920_p9)
}
  0xa7   :  { %120 = dma.hbm_to_vmem [thread:$0]  %s2400_s8, 64, %s118_s13, [#allocation15]  }
  0xa8   :  { %s1996_s29 = smov [#allocation19]   ;;  %s1924_s12 = scalar_lea.hbm %s2402_s10, 16 }
  0xa9   :  { %s139_s9 = sshll.u32 %s1996_s29, 4  ;;  %p1925_p10 = scmp.ne.s32.totalorder %s2402_s10, %s1924_s12  ;;  %s140_s9 = int_to_ptr.vmem [resolvable:$true] %s139_s9 }
  0xaa   :  { %p1928_p11 = scmp.lt.u32.totalorder %s1924_s12, %s2402_s10 }
  0xac   :  { %p1930_p12 = pnand %p1928_p11, %p1925_p10 }
  0xae   :  { %1933 = shalt.err (!%p1930_p12)
}
  0xaf   :  { %s1934_s22 = scalar_lea.vmem %s140_s9, 16  ;;  %s1938_s8 = scalar_lea.vmem %s140_s9, 32 }
  0xb0   :  { %p1935_p13 = scmp.ne.s32.totalorder %s140_s9, %s1934_s22  ;;  %p1939_p0 = scmp.lt.s32.totalorder %s140_s9, %s140_s9 }
  0xb1   :  { %p1940_p1 = scmp.lt.s32.totalorder %s1938_s8, %s1934_s22 }
  0xb3   :  { %p1941_p2 = por %p1940_p1, %p1939_p0 }
  0xb5   :  { %p1942_p3 = pnand %p1941_p2, %p1935_p13 }
  0xb7   :  { %1945 = shalt.err (!%p1942_p3)
}
  0xb8   :  { %142 = dma.hbm_to_vmem [thread:$0]  %s2402_s10, 16, %s140_s9, [#allocation18]  }
  0xb9   :  { %1968 = dma.done.wait [#allocation3], 64  }
  0xba   :  { %1969 = vsyncadd [#allocation3], 4294967232 }
  0xbb   :  { %1970 = dma.done.wait [#allocation6], 2176  }
  0xbc   :  { %1971 = vsyncadd [#allocation6], 4294965120 }
  0xbd   :  { %1972 = dma.done.wait [#allocation9], 2080  }
  0xbe   :  { %1973 = vsyncadd [#allocation9], 4294965216 }
  0xbf   :  { %1974 = dma.done.wait [#allocation12], 64  }
  0xc0   :  { %1975 = vsyncadd [#allocation12], 4294967232 }
  0xc1   :  { %1976 = dma.done.wait [#allocation15], 2112  }
  0xc2   :  { %1977 = vsyncadd [#allocation15], 4294965184 }
  0xc3   :  { %1978 = dma.done.wait [#allocation18], 2064  }
  0xc4   :  { %1979 = vsyncadd [#allocation18], 4294965232  ;;  %v1997_v0 = vmov 0.0   ;;  %vm1998_vm0 = vmmov 0   ;;  %v1999_v1 = vmov 0.0|0.0   ;;  %v1637_v2 = vld [vmem:[#allocation7] sm:$0xff]   ;;  %v264_v39 = vlaneseq }
  0xc5   :  { %1393 = vmatprep.subr.bf16.mxu0 %v1997_v0  ;;  %1395 = vmatprep.mubr.msk.bf16.mxu0 %vm1998_vm0, %v1997_v0  ;;  %v194_v3 = vld [vmem:[#allocation2] sm:$0xf]  ;;  %v177_v4 = vld [vmem:[#allocation5] sm:$0xff]  ;;  %v178_v5 = vld [vmem:[#allocation5 + $0x8] sm:$0xff]  ;;  %vm204_vm1 = vcmask 130048   ;;  %vm248_vm2 = vcmask 1043456  }
  0xc6   :  { %1544 = vmatprep.subr.bf16.mxu1 %v1999_v1  ;;  %1431 = vmatprep.mubr.msk.f32.mxu1 %vm1998_vm0, %v1997_v0  ;;  %v197_v6 = vpack.c.bf16 %v194_v3, %v194_v3  ;;  %v2223_v7 = vpack.c.bf16 %v178_v5, %v177_v4  ;;  %v179_v8 = vld [vmem:[#allocation5 + $0x10] sm:$0xff]  ;;  %v180_v9 = vld [vmem:[#allocation5 + $0x18] sm:$0xff]  ;;  %v181_v10 = vld [vmem:[#allocation5 + $0x20] sm:$0xff]  ;;  %v2265_v44 = vshrl.u32 %v264_v39, 7  ;;  %s2002_s10 = smov [#allocation20]  }
  0xc7   :  { %1394 = vmatpush3.bf16.msra.mxu0 %v1637_v2  ;;  %v182_v11 = vld [vmem:[#allocation5 + $0x28] sm:$0xff]  ;;  %v2227_v12 = vpack.c.bf16 %v180_v9, %v179_v8  ;;  %v183_v13 = vld [vmem:[#allocation5 + $0x30] sm:$0xff]  ;;  %v184_v14 = vld [vmem:[#allocation5 + $0x38] sm:$0xff]  ;;  %s1233_s20 = sshll.u32 %s2002_s10, 4  ;;  %s1234_s20 = int_to_ptr.vmem [resolvable:$true] %s1233_s20 }
  0xc8   :  { %1434 = vmatprep.subr.bf16.mxu0 %v1997_v0  ;;  %1546 = vmatpush3.bf16.msra.mxu1 %v2223_v7  ;;  %v2233_v15 = vpack.c.bf16 %v182_v11, %v181_v10  ;;  %v2237_v16 = vpack.c.bf16 %v184_v14, %v183_v13  ;;  %v185_v17 = vld [vmem:[#allocation5 + $0x40] sm:$0xff]  ;;  %v186_v18 = vld [vmem:[#allocation5 + $0x48] sm:$0xff]  ;;  %v187_v20 = vld [vmem:[#allocation5 + $0x50] sm:$0xff]  ;;  %vm266_vm3 = vcmp.eq.s32.totalorder %v2265_v44, 0  ;;  %v2297_v59 = vsub.s32 0, %v2265_v44  ;;  %s1946_s23 = scalar_lea.vmem %s1234_s20, 64  ;;  %p1951_p5 = scmp.lt.s32.totalorder %s1234_s20, %s1234_s20 }
  0xc9   :  { %1547 = vmatprep.subr.bf16.mxu1 %v1999_v1  ;;  %v2242_v19 = vpack.c.bf16 %v186_v18, %v185_v17  ;;  %v188_v21 = vld [vmem:[#allocation5 + $0x58] sm:$0xff]  ;;  %v189_v23 = vld [vmem:[#allocation5 + $0x60] sm:$0xff]  ;;  %v190_v24 = vld [vmem:[#allocation5 + $0x68] sm:$0xff]  ;;  %v2302_v11 = vsub.s32 1, %v2265_v44  ;;  %p1947_p4 = scmp.ne.s32.totalorder %s1234_s20, %s1946_s23  ;;  %p1952_p6 = scmp.lt.s32.totalorder %s1946_s23, %s1946_s23 }
  0xca   :  { %1396 = vmatmul.mubr.msk.bf16.vlgmr.msra.gmra.mrb[0].mxu0 %vm204_vm1, %v197_v6  ;;  %v2246_v22 = vpack.c.bf16 %v188_v21, %v187_v20  ;;  %v2250_v25 = vpack.c.bf16 %v190_v24, %v189_v23  ;;  %v191_v26 = vld [vmem:[#allocation5 + $0x70] sm:$0xff]  ;;  %v192_v27 = vld [vmem:[#allocation5 + $0x78] sm:$0xff]  ;;  %v1641_v54 = vld [vmem:[#allocation10 + $0x18] sm:$0xff]  }
  0xcb   :  { %1450 = vmatprep.mubr.msk.bf16.mxu0 %vm1998_vm0, %v1997_v0  ;;  %v2253_v28 = vpack.c.bf16 %v192_v27, %v191_v26  ;;  %v1638_v51 = vld [vmem:[#allocation10] sm:$0xff]   ;;  %v1639_v52 = vld [vmem:[#allocation10 + $0x8] sm:$0xff]   ;;  %v1640_v53 = vld [vmem:[#allocation10 + $0x10] sm:$0xff]   ;;  %p1953_p7 = por %p1952_p6, %p1951_p5 }
  0xcc   :  { %1549 = vmatpush3.bf16.msra.mxu1 %v2227_v12  ;;  %1435 = vmatpush3.bf16.msra.mxu0 %v1638_v51  ;;  %v1642_v55 = vld [vmem:[#allocation10 + $0x20] sm:$0xff]   ;;  %v1643_v56 = vld [vmem:[#allocation10 + $0x28] sm:$0xff]   ;;  %v1644_v57 = vld [vmem:[#allocation10 + $0x30] sm:$0xff]  }
  0xcd   :  { %1550 = vmatprep.subr.bf16.mxu1 %v1999_v1  ;;  %1436 = vmatprep.subr.bf16.mxu0 %v1997_v0  ;;  %v1645_v58 = vld [vmem:[#allocation10 + $0x38] sm:$0xff]   ;;  %p1954_p8 = pnand %p1953_p7, %p1947_p4 }
  0xce   :  { %v193_v9 = vld [vmem:[#allocation8] sm:$0x3] }
  0xcf   :  { %v363_v17 = vrot.slane %v193_v9, %v2302_v11 }
  0xd0   :  { %1552 = vmatpush3.bf16.msra.mxu1 %v2233_v15  ;;  %1437 = vmatpush3.bf16.msra.mxu0 %v1639_v52 }
  0xd1   :  { %1553 = vmatprep.subr.bf16.mxu1 %v1999_v1  ;;  %1438 = vmatprep.subr.bf16.mxu0 %v1997_v0 }
  0xd4   :  { %1555 = vmatpush3.bf16.msra.mxu1 %v2237_v16  ;;  %1439 = vmatpush3.bf16.msra.mxu0 %v1640_v53 }
  0xd5   :  { %1556 = vmatprep.subr.bf16.mxu1 %v1999_v1  ;;  %1440 = vmatprep.subr.bf16.mxu0 %v1997_v0 }
  0xd8   :  { %1558 = vmatpush3.bf16.msra.mxu1 %v2242_v19  ;;  %1441 = vmatpush3.bf16.msra.mxu0 %v1641_v54 }
  0xd9   :  { %1559 = vmatprep.subr.bf16.mxu1 %v1999_v1  ;;  %1442 = vmatprep.subr.bf16.mxu0 %v1997_v0 }
  0xdc   :  { %1561 = vmatpush3.bf16.msra.mxu1 %v2246_v22  ;;  %1443 = vmatpush3.bf16.msra.mxu0 %v1642_v55 }
  0xdd   :  { %1562 = vmatprep.subr.bf16.mxu1 %v1999_v1  ;;  %1444 = vmatprep.subr.bf16.mxu0 %v1997_v0 }
  0xe0   :  { %1564 = vmatpush3.bf16.msra.mxu1 %v2250_v25  ;;  %1445 = vmatpush3.bf16.msra.mxu0 %v1643_v56  ;;  %v382_v56 = vld [vmem:[#allocation11] sm:$0x1] }
  0xe1   :  { %1565 = vmatprep.subr.bf16.mxu1 %v1999_v1  ;;  %1446 = vmatprep.subr.bf16.mxu0 %v1997_v0 }
  0xe4   :  { %1567 = vmatpush3.bf16.msra.mxu1 %v2253_v28  ;;  %1447 = vmatpush3.bf16.msra.mxu0 %v1644_v57 }
  0xe5   :  { %1568 = vmatprep.subr.bf16.mxu1 %v1999_v1  ;;  %1448 = vmatprep.subr.bf16.mxu0 %v1997_v0 }
  0xe8   :  { %1449 = vmatpush3.bf16.msra.mxu0 %v1645_v58 }
  0xe9   :  { %1489 = vmatprep.subr.bf16.mxu0 %v1997_v0 }
 0x19d   :  { %v2258_v29 = vpop.f32.mrb[0].mxu0 }
 0x19e   :  { %v249_v30 = vsel %vm248_vm2, %v2258_v29, 0.0  ;;  %v256_v31 = vmul.f32 %v2258_v29, %v2258_v29  ;;  %v1397_v32 = vpop.f32.mrb[1].mxu0 }
 0x19f   :  { %v250_v33 = vrot.slane %v249_v30, 4  ;;  %v245_v34 = vpop.f32.mrb[2].mxu0 }
 0x1a0   :  { %v257_v35 = vsel %vm248_vm2, %v256_v31, 0.0  ;;  %v1398_v36 = vpop.f32.mrb[3].mxu0 }
 0x1a1   :  { %v251_v37 = vadd.f32 %v250_v33, %v249_v30  ;;  %v258_v38 = vrot.slane %v257_v35, 4 }
 0x1a3   :  { %v252_v40 = vrot.slane %v251_v37, 2  ;;  %v259_v41 = vadd.f32 %v258_v38, %v257_v35 }
 0x1a5   :  { %v253_v42 = vadd.f32 %v252_v40, %v251_v37  ;;  %v260_v43 = vrot.slane %v259_v41, 2 }
 0x1a7   :  { %v254_v45 = vrot.slane %v253_v42, 1  ;;  %v261_v46 = vadd.f32 %v260_v43, %v259_v41 }
 0x1a9   :  { %v262_v47 = vrot.slane %v261_v46, 1  ;;  %v255_v48 = vadd.f32 %v254_v45, %v253_v42 }
 0x1ab   :  { %v263_v49 = vadd.f32 %v262_v47, %v261_v46 }
 0x1ad   :  { %v267_v50 = vsel %vm266_vm3, %v255_v48, %v263_v49 }
 0x1ae   :  { %1432 = vmatmul.mubr.f32.vlgmr.msra.gmra.mrb[0].mxu1 %v267_v50 }
 0x1af   :  { %1570 = vmatpush3.bf16.msra.mxu1 %v2223_v7  ;;  %1486 = vmatprep.mubr.msk.f32.mxu1 %vm1998_vm0, %v1997_v0 }
 0x1b0   :  { %1571 = vmatprep.subr.bf16.mxu1 %v1999_v1 }
 0x1b3   :  { %1573 = vmatpush3.bf16.msra.mxu1 %v2227_v12 }
 0x1b4   :  { %1574 = vmatprep.subr.bf16.mxu1 %v1999_v1 }
 0x1b7   :  { %1576 = vmatpush3.bf16.msra.mxu1 %v2233_v15 }
 0x1b8   :  { %1577 = vmatprep.subr.bf16.mxu1 %v1999_v1 }
 0x1bb   :  { %1579 = vmatpush3.bf16.msra.mxu1 %v2237_v16 }
 0x1bc   :  { %1580 = vmatprep.subr.bf16.mxu1 %v1999_v1 }
 0x1bf   :  { %1582 = vmatpush3.bf16.msra.mxu1 %v2242_v19 }
 0x1c0   :  { %1583 = vmatprep.subr.bf16.mxu1 %v1999_v1 }
 0x1c3   :  { %1585 = vmatpush3.bf16.msra.mxu1 %v2246_v22 }
 0x1c4   :  { %1586 = vmatprep.subr.bf16.mxu1 %v1999_v1 }
 0x1c7   :  { %1588 = vmatpush3.bf16.msra.mxu1 %v2250_v25 }
 0x1c8   :  { %1589 = vmatprep.subr.bf16.mxu1 %v1999_v1 }
 0x1cb   :  { %1591 = vmatpush3.bf16.msra.mxu1 %v2253_v28 }
 0x1cc   :  { %1592 = vmatprep.subr.bf16.mxu1 %v1999_v1 }
 0x281   :  { %v334_v60 = vpop.f32.mrb[0].mxu1 }
 0x282   :  { %v338_v61 = vmul.f32 0.015625, %v334_v60  ;;  %v1433_v62 = vpop.f32.mrb[1].mxu1 }
 0x284   :  { %v339_v63 = vmul.f32 %v338_v61, %v338_v61  ;;  %v347_v2 = vrot.slane %v338_v61, %v2297_v59 }
 0x286   :  { %v341_v3 = vrot.slane %v339_v63, 7  ;;  %v348_v4 = vsub.f32 %v2258_v29, %v347_v2 }
 0x288   :  { %v343_v5 = vsub.f32 %v338_v61, %v341_v3 }
 0x28a   :  { %v349_v6 = vadd.f32 1e-05, %v343_v5 }
 0x28c   :  { %1694 = vrsqrt.f32 %v349_v6 }
 0x296   :  { %v1695_v8 = vpop.eup %1694 }
 0x297   :  { %v352_v10 = vrot.slane %v1695_v8, 1 }
 0x299   :  { %v354_v13 = vmul.f32 %v352_v10, %v193_v9 }
 0x29b   :  { %v358_v14 = vrot.slane %v354_v13, %v2297_v59 }
 0x29d   :  { %v359_v18 = vmul.f32 %v358_v14, %v348_v4 }
 0x29f   :  { %v364_v20 = vadd.f32 %v363_v17, %v359_v18 }
 0x2a1   :  { %v2306_v21 = vmax.f32 %v364_v20, 0.0 }
 0x2a3   :  { %v384_v23 = vpack.c.bf16 %v2306_v21, %v2306_v21 }
 0x2a5   :  { %1451 = vmatmul.mubr.bf16.vlgmr.msra.gmra.mrb[4].mxu0 %v384_v23 }
 0x2a6   :  { %1505 = vmatprep.mubr.msk.bf16.mxu0 %vm1998_vm0, %v1997_v0 }
 0x378   :  { %v2312_v24 = vpop.f32.mrb[4].mxu0 }
 0x379   :  { %v473_v26 = vsel %vm248_vm2, %v2312_v24, 0.0  ;;  %v480_v27 = vmul.f32 %v2312_v24, %v2312_v24  ;;  %v1452_v29 = vpop.f32.mrb[5].mxu0 }
 0x37a   :  { %v474_v30 = vrot.slane %v473_v26, 4  ;;  %v470_v31 = vpop.f32.mrb[6].mxu0 }
 0x37b   :  { %v481_v32 = vsel %vm248_vm2, %v480_v27, 0.0  ;;  %v1453_v33 = vpop.f32.mrb[7].mxu0 }
 0x37c   :  { %v475_v34 = vadd.f32 %v474_v30, %v473_v26  ;;  %v482_v35 = vrot.slane %v481_v32, 4  ;;  %v1656_v33 = vld [vmem:[#allocation14 + $0x4] ss:$8 sps:$4 sm:$0xff]  }
 0x37e   :  { %v476_v36 = vrot.slane %v475_v34, 2  ;;  %v483_v37 = vadd.f32 %v482_v35, %v481_v32  ;;  %v1659_v35 = vld [vmem:[#allocation14 + $0x14] ss:$8 sps:$4 sm:$0xff]  }
 0x380   :  { %v477_v38 = vadd.f32 %v476_v36, %v475_v34  ;;  %v484_v39 = vrot.slane %v483_v37, 2  ;;  %v1654_v34 = vld [vmem:[#allocation14] ss:$8 sps:$4 sm:$0xff]   ;;  %v1657_v36 = vld [vmem:[#allocation14 + $0x10] ss:$8 sps:$4 sm:$0xff]  }
 0x382   :  { %v478_v40 = vrot.slane %v477_v38, 1  ;;  %v485_v41 = vadd.f32 %v484_v39, %v483_v37  ;;  %v1662_v37 = vld [vmem:[#allocation14 + $0x24] ss:$8 sps:$4 sm:$0xff]   ;;  %v1665_v39 = vld [vmem:[#allocation14 + $0x34] ss:$8 sps:$4 sm:$0xff]  }
 0x384   :  { %v486_v42 = vrot.slane %v485_v41, 1  ;;  %v479_v43 = vadd.f32 %v478_v40, %v477_v38  ;;  %v1660_v38 = vld [vmem:[#allocation14 + $0x20] ss:$8 sps:$4 sm:$0xff]   ;;  %v1663_v40 = vld [vmem:[#allocation14 + $0x30] ss:$8 sps:$4 sm:$0xff]  }
 0x386   :  { %v487_v45 = vadd.f32 %v486_v42, %v485_v41  ;;  %v1668_v41 = vld [vmem:[#allocation14 + $0x44] ss:$8 sps:$4 sm:$0xff]   ;;  %v1666_v42 = vld [vmem:[#allocation14 + $0x40] ss:$8 sps:$4 sm:$0xff]  }
 0x388   :  { %v488_v46 = vsel %vm266_vm3, %v479_v43, %v487_v45  ;;  %v1671_v43 = vld [vmem:[#allocation14 + $0x54] ss:$8 sps:$4 sm:$0xff]   ;;  %v1669_v45 = vld [vmem:[#allocation14 + $0x50] ss:$8 sps:$4 sm:$0xff]  }
 0x389   :  { %1487 = vmatmul.mubr.f32.vlgmr.msra.gmra.mrb[2].mxu1 %v488_v46  ;;  %v1672_v46 = vld [vmem:[#allocation14 + $0x60] ss:$8 sps:$4 sm:$0xff]  }
 0x38a   :  { %1594 = vmatpush3.bf16.msra.mxu1 %v2223_v7  ;;  %1541 = vmatprep.mubr.msk.f32.mxu1 %vm1998_vm0, %v1997_v0  ;;  %v1646_v7 = vld [vmem:[#allocation10 + $0x40] sm:$0xff]  }
 0x38b   :  { %1595 = vmatprep.subr.bf16.mxu1 %v1999_v1  ;;  %1490 = vmatpush3.bf16.msra.mxu0 %v1646_v7  ;;  %v1674_v7 = vld [vmem:[#allocation14 + $0x64] ss:$8 sps:$4 sm:$0xff]  }
 0x38c   :  { %1491 = vmatprep.subr.bf16.mxu0 %v1997_v0 }
 0x38e   :  { %1597 = vmatpush3.bf16.msra.mxu1 %v2227_v12  ;;  %v1647_v12 = vld [vmem:[#allocation10 + $0x48] sm:$0xff]  }
 0x38f   :  { %1598 = vmatprep.subr.bf16.mxu1 %v1999_v1  ;;  %1492 = vmatpush3.bf16.msra.mxu0 %v1647_v12  ;;  %v1677_v12 = vld [vmem:[#allocation14 + $0x74] ss:$8 sps:$4 sm:$0xff]  }
 0x390   :  { %1493 = vmatprep.subr.bf16.mxu0 %v1997_v0 }
 0x392   :  { %1600 = vmatpush3.bf16.msra.mxu1 %v2233_v15  ;;  %v1648_v15 = vld [vmem:[#allocation10 + $0x50] sm:$0xff]  }
 0x393   :  { %1601 = vmatprep.subr.bf16.mxu1 %v1999_v1  ;;  %1494 = vmatpush3.bf16.msra.mxu0 %v1648_v15  ;;  %v2000_v15 = vmov 0  }
 0x394   :  { %1495 = vmatprep.subr.bf16.mxu0 %v1997_v0 }
 0x396   :  { %1603 = vmatpush3.bf16.msra.mxu1 %v2237_v16  ;;  %v1649_v16 = vld [vmem:[#allocation10 + $0x58] sm:$0xff]  }
 0x397   :  { %1604 = vmatprep.subr.bf16.mxu1 %v1999_v1  ;;  %1496 = vmatpush3.bf16.msra.mxu0 %v1649_v16  ;;  %v1675_v16 = vld [vmem:[#allocation14 + $0x70] ss:$8 sps:$4 sm:$0xff]  }
 0x398   :  { %1497 = vmatprep.subr.bf16.mxu0 %v1997_v0 }
 0x39a   :  { %1606 = vmatpush3.bf16.msra.mxu1 %v2242_v19  ;;  %v1650_v19 = vld [vmem:[#allocation10 + $0x60] sm:$0xff]  }
 0x39b   :  { %1607 = vmatprep.subr.bf16.mxu1 %v1999_v1  ;;  %1498 = vmatpush3.bf16.msra.mxu0 %v1650_v19 }
 0x39c   :  { %1499 = vmatprep.subr.bf16.mxu0 %v1997_v0 }
 0x39e   :  { %1609 = vmatpush3.bf16.msra.mxu1 %v2246_v22  ;;  %v1652_v22 = vld [vmem:[#allocation10 + $0x70] sm:$0xff]  }
 0x39f   :  { %1610 = vmatprep.subr.bf16.mxu1 %v1999_v1 }
 0x3a2   :  { %1612 = vmatpush3.bf16.msra.mxu1 %v2250_v25  ;;  %v1653_v25 = vld [vmem:[#allocation10 + $0x78] sm:$0xff]  }
 0x3a3   :  { %1613 = vmatprep.subr.bf16.mxu1 %v1999_v1  ;;  %v1651_v1 = vld [vmem:[#allocation10 + $0x68] sm:$0xff]  }
 0x3a4   :  { %1500 = vmatpush3.bf16.msra.mxu0 %v1651_v1 }
 0x3a5   :  { %1501 = vmatprep.subr.bf16.mxu0 %v1997_v0 }
 0x3a6   :  { %1615 = vmatpush3.bf16.msra.mxu1 %v2253_v28 }
 0x3a8   :  { %1502 = vmatpush3.bf16.msra.mxu0 %v1652_v22 }
 0x3a9   :  { %1503 = vmatprep.subr.bf16.mxu0 %v1997_v0  ;;  %v1257_v0 = vld [vmem:[#allocation13] ss:$0 sm:$0xff] }
 0x3ac   :  { %1504 = vmatpush3.bf16.msra.mxu0 %v1653_v25 }
 0x3ad   :  { %908 = vmatprep.subr.bf16.mxu0 %v1656_v33 }
 0x45c   :  { %v555_v28 = vpop.f32.mrb[2].mxu1 }
 0x45d   :  { %v559_v47 = vmul.f32 0.015625, %v555_v28  ;;  %v1488_v48 = vpop.f32.mrb[3].mxu1 }
 0x45f   :  { %v560_v49 = vmul.f32 %v559_v47, %v559_v47  ;;  %v568_v50 = vrot.slane %v559_v47, %v2297_v59 }
 0x461   :  { %v562_v51 = vrot.slane %v560_v49, 7  ;;  %v569_v52 = vsub.f32 %v2312_v24, %v568_v50 }
 0x463   :  { %v564_v53 = vsub.f32 %v559_v47, %v562_v51 }
 0x465   :  { %v570_v54 = vadd.f32 1e-05, %v564_v53 }
 0x467   :  { %1696 = vrsqrt.f32 %v570_v54 }
 0x471   :  { %v1697_v55 = vpop.eup %1696 }
 0x472   :  { %v573_v57 = vrot.slane %v1697_v55, 1 }
 0x474   :  { %v575_v58 = vmul.f32 %v573_v57, %v382_v56  ;;  %v1266_v56 = vld [vmem:[#allocation13 + $0x1] ss:$0 sm:$0xff] }
 0x476   :  { %v579_v60 = vrot.slane %v575_v58, %v2297_v59 }
 0x478   :  { %v580_v61 = vmul.f32 %v579_v60, %v569_v52  ;;  %v604_v52 = vld [vmem:[#allocation11 + $0x1] sm:$0x1] }
 0x47a   :  { %v585_v62 = vadd.f32 %v1257_v0, %v580_v61 }
 0x47c   :  { %v586_v63 = vmax.f32 %v585_v62, 0.0  ;;  %v1678_v62 = vld [vmem:[#allocation17 + $0x40] sm:$0xff]  }
 0x47d   :  { %1371 = vmatprep.subr.bf16.mxu1 %v1678_v62 }
 0x47e   :  { %v606_v2 = vpack.c.bf16 %v586_v63, %v586_v63  ;;  %v1679_v63 = vld [vmem:[#allocation17] sm:$0xff]  }
 0x480   :  { %1506 = vmatmul.mubr.bf16.vlgmr.msra.gmra.mrb[8].mxu0 %v606_v2  ;;  %v1680_v2 = vld [vmem:[#allocation17 + $0x48] sm:$0xff]  }
 0x481   :  { %909 = vmatpush1.bf16.msra.mxu0 %v1654_v34  ;;  %940 = vmatprep.mubr.bf16.mxu0 %v2000_v15 }
 0x482   :  { %910 = vmatprep.subr.bf16.mxu0 %v1659_v35 }
 0x485   :  { %911 = vmatpush1.bf16.msra.mxu0 %v1657_v36 }
 0x486   :  { %912 = vmatprep.subr.bf16.mxu0 %v1662_v37 }
 0x489   :  { %913 = vmatpush1.bf16.msra.mxu0 %v1660_v38 }
 0x48a   :  { %914 = vmatprep.subr.bf16.mxu0 %v1665_v39 }
 0x48d   :  { %915 = vmatpush1.bf16.msra.mxu0 %v1663_v40 }
 0x48e   :  { %916 = vmatprep.subr.bf16.mxu0 %v1668_v41 }
 0x491   :  { %917 = vmatpush1.bf16.msra.mxu0 %v1666_v42 }
 0x492   :  { %918 = vmatprep.subr.bf16.mxu0 %v1671_v43 }
 0x495   :  { %919 = vmatpush1.bf16.msra.mxu0 %v1669_v45 }
 0x496   :  { %920 = vmatprep.subr.bf16.mxu0 %v1674_v7 }
 0x499   :  { %921 = vmatpush1.bf16.msra.mxu0 %v1672_v46 }
 0x49a   :  { %922 = vmatprep.subr.bf16.mxu0 %v1677_v12 }
 0x49d   :  { %923 = vmatpush1.bf16.msra.mxu0 %v1675_v16 }
 0x553   :  { %v689_v3 = vpop.f32.mrb[8].mxu0 }
 0x554   :  { %v695_v4 = vsel %vm248_vm2, %v689_v3, 0.0  ;;  %v702_v5 = vmul.f32 %v689_v3, %v689_v3  ;;  %v1507_v6 = vpop.f32.mrb[9].mxu0 }
 0x555   :  { %v696_v8 = vrot.slane %v695_v4, 4  ;;  %v692_v9 = vpop.f32.mrb[10].mxu0  ;;  %v1684_v6 = vld [vmem:[#allocation17 + $0x58] sm:$0xff]  }
 0x556   :  { %v703_v10 = vsel %vm248_vm2, %v702_v5, 0.0  ;;  %v1508_v13 = vpop.f32.mrb[11].mxu0  ;;  %v1683_v5 = vld [vmem:[#allocation17 + $0x10] sm:$0xff]   ;;  %v1687_v9 = vld [vmem:[#allocation17 + $0x20] sm:$0xff]  }
 0x557   :  { %v697_v14 = vadd.f32 %v696_v8, %v695_v4  ;;  %v704_v17 = vrot.slane %v703_v10, 4  ;;  %v1682_v4 = vld [vmem:[#allocation17 + $0x50] sm:$0xff]   ;;  %v1685_v8 = vld [vmem:[#allocation17 + $0x18] sm:$0xff]   ;;  %v1689_v13 = vld [vmem:[#allocation17 + $0x28] sm:$0xff]  }
 0x559   :  { %v698_v18 = vrot.slane %v697_v14, 2  ;;  %v705_v20 = vadd.f32 %v704_v17, %v703_v10  ;;  %v1688_v10 = vld [vmem:[#allocation17 + $0x68] sm:$0xff]   ;;  %v1691_v17 = vld [vmem:[#allocation17 + $0x30] sm:$0xff]  }
 0x55b   :  { %v699_v23 = vadd.f32 %v698_v18, %v697_v14  ;;  %v706_v24 = vrot.slane %v705_v20, 2  ;;  %v1690_v14 = vld [vmem:[#allocation17 + $0x70] sm:$0xff]   ;;  %v1692_v18 = vld [vmem:[#allocation17 + $0x78] sm:$0xff]  }
 0x55d   :  { %v700_v26 = vrot.slane %v699_v23, 1  ;;  %v707_v27 = vadd.f32 %v706_v24, %v705_v20  ;;  %v1693_v20 = vld [vmem:[#allocation17 + $0x38] sm:$0xff]  }
 0x55f   :  { %v708_v29 = vrot.slane %v707_v27, 1  ;;  %v701_v30 = vadd.f32 %v700_v26, %v699_v23 }
 0x561   :  { %v709_v31 = vadd.f32 %v708_v29, %v707_v27 }
 0x563   :  { %v710_v32 = vsel %vm266_vm3, %v701_v30, %v709_v31 }
 0x564   :  { %1542 = vmatmul.mubr.f32.vlgmr.msra.gmra.mrb[4].mxu1 %v710_v32 }
 0x565   :  { %1372 = vmatpush3.bf16.msra.mxu1 %v1679_v63 }
 0x566   :  { %1373 = vmatprep.subr.bf16.mxu1 %v1680_v2 }
 0x637   :  { %v777_v19 = vpop.f32.mrb[4].mxu1 }
 0x638   :  { %v781_v1 = vmul.f32 0.015625, %v777_v19  ;;  %v1543_v22 = vpop.f32.mrb[5].mxu1 }
 0x63a   :  { %v782_v25 = vmul.f32 %v781_v1, %v781_v1  ;;  %v790_v28 = vrot.slane %v781_v1, %v2297_v59 }
 0x63c   :  { %v784_v47 = vrot.slane %v782_v25, 7  ;;  %v791_v48 = vsub.f32 %v689_v3, %v790_v28  ;;  %v1681_v3 = vld [vmem:[#allocation17 + $0x8] sm:$0xff]  }
 0x63d   :  { %1374 = vmatpush3.bf16.msra.mxu1 %v1681_v3 }
 0x63e   :  { %v786_v49 = vsub.f32 %v781_v1, %v784_v47  ;;  %1375 = vmatprep.subr.bf16.mxu1 %v1682_v4 }
 0x640   :  { %v792_v50 = vadd.f32 1e-05, %v786_v49 }
 0x641   :  { %1376 = vmatpush3.bf16.msra.mxu1 %v1683_v5  ;;  %v1033_v5 = vsub.s32 3, %v2265_v44 }
 0x642   :  { %1698 = vrsqrt.f32 %v792_v50  ;;  %1377 = vmatprep.subr.bf16.mxu1 %v1684_v6 }
 0x645   :  { %1378 = vmatpush3.bf16.msra.mxu1 %v1685_v8  ;;  %v810_v8 = vld [vmem:[#allocation16] sm:$0xf] }
 0x64c   :  { %v1699_v51 = vpop.eup %1698 }
 0x64d   :  { %v795_v53 = vrot.slane %v1699_v51, 1 }
 0x64f   :  { %v797_v54 = vmul.f32 %v795_v53, %v604_v52 }
 0x651   :  { %v801_v55 = vrot.slane %v797_v54, %v2297_v59 }
 0x653   :  { %v802_v57 = vmul.f32 %v801_v55, %v791_v48 }
 0x655   :  { %v807_v58 = vadd.f32 %v1266_v56, %v802_v57 }
 0x657   :  { %v808_v60 = vadd.f32 %v807_v58, %v2306_v21  ;;  %v1686_v21 = vld [vmem:[#allocation17 + $0x60] sm:$0xff]  }
 0x658   :  { %1379 = vmatprep.subr.bf16.mxu1 %v1686_v21 }
 0x659   :  { %v809_v0 = vmax.f32 %v808_v60, 0.0  ;;  %1380 = vmatpush3.bf16.msra.mxu1 %v1687_v9  ;;  %v1012_v9 = vsub.s32 2, %v2265_v44 }
 0x65a   :  { %1381 = vmatprep.subr.bf16.mxu1 %v1688_v10  ;;  %v1034_v10 = vrot.slane %v810_v8, %v1033_v5 }
 0x65b   :  { %v827_v61 = vpack.c.bf16 %v809_v0, %v809_v0 }
 0x65d   :  { %941 = vmatmul.mubr.bf16.vlgmr.msra.gmra.mrb[12].mxu0 %v827_v61  ;;  %1382 = vmatpush3.bf16.msra.mxu1 %v1689_v13  ;;  %v2001_v61 = vmov 1983009808   ;;  %v1030_v13 = vrot.slane %v810_v8, %v2302_v11 }
 0x65e   :  { %1383 = vmatprep.subr.bf16.mxu1 %v1690_v14  ;;  %v997_v62 = vunpack.c.l.s4 %v2001_v61 }
 0x660   :  { %v998_v63 = vunpack.c.0.s8 %v997_v62 }
 0x661   :  { %1384 = vmatpush3.bf16.msra.mxu1 %v1691_v17 }
 0x662   :  { %1385 = vmatprep.subr.bf16.mxu1 %v1692_v18  ;;  %v1001_v3 = vsub.s32 %v998_v63, %v2265_v44 }
 0x665   :  { %1386 = vmatpush3.bf16.msra.mxu1 %v1693_v20  ;;  %v1044_v20 = vrot.slane %v1034_v10, %v2302_v11 }
 0x730   :  { %v2355_v23 = vpop.f32.mrb[12].mxu0 }
 0x731   :  { %v949_v24 = vsel %vm248_vm2, %v2355_v23, 0.0  ;;  %v965_v26 = vmul.f32 %v2355_v23, %v2355_v23  ;;  %v2361_v27 = vpop.f32.mrb[13].mxu0 }
 0x732   :  { %v950_v29 = vrot.slane %v949_v24, 4  ;;  %v956_v30 = vsel %vm248_vm2, %v2361_v27, 0.0  ;;  %v966_v31 = vmul.f32 %v2361_v27, %v2361_v27  ;;  %v946_v32 = vpop.f32.mrb[14].mxu0 }
 0x733   :  { %v967_v33 = vsel %vm248_vm2, %v965_v26, 0.0  ;;  %v957_v34 = vrot.slane %v956_v30, 4  ;;  %v947_v35 = vpop.f32.mrb[15].mxu0 }
 0x734   :  { %v951_v36 = vadd.f32 %v950_v29, %v949_v24  ;;  %v968_v37 = vrot.slane %v967_v33, 4  ;;  %v974_v38 = vsel %vm248_vm2, %v966_v31, 0.0  ;;  %v1040_v24 = vrot.slane %v1030_v13, %v2302_v11  ;;  %v1283_v11 = vld [vmem:[#allocation19] ss:$0 sm:$0xff] }
 0x735   :  { %v958_v39 = vadd.f32 %v957_v34, %v956_v30  ;;  %v975_v40 = vrot.slane %v974_v38, 4 }
 0x736   :  { %v952_v41 = vrot.slane %v951_v36, 2  ;;  %v969_v42 = vadd.f32 %v968_v37, %v967_v33 }
 0x737   :  { %v959_v43 = vrot.slane %v958_v39, 2  ;;  %v976_v45 = vadd.f32 %v975_v40, %v974_v38 }
 0x738   :  { %v953_v46 = vadd.f32 %v952_v41, %v951_v36  ;;  %v970_v7 = vrot.slane %v969_v42, 2 }
 0x739   :  { %v960_v12 = vadd.f32 %v959_v43, %v958_v39  ;;  %v977_v15 = vrot.slane %v976_v45, 2 }
 0x73a   :  { %v954_v16 = vrot.slane %v953_v46, 1  ;;  %v971_v19 = vadd.f32 %v970_v7, %v969_v42 }
 0x73b   :  { %v961_v1 = vrot.slane %v960_v12, 1  ;;  %v978_v22 = vadd.f32 %v977_v15, %v976_v45 }
 0x73c   :  { %v955_v25 = vadd.f32 %v954_v16, %v953_v46  ;;  %v972_v28 = vrot.slane %v971_v19, 1 }
 0x73d   :  { %v962_v47 = vadd.f32 %v961_v1, %v960_v12  ;;  %v979_v48 = vrot.slane %v978_v22, 1 }
 0x73e   :  { %v963_v49 = vmul.f32 0.25, %v955_v25  ;;  %v973_v50 = vadd.f32 %v972_v28, %v971_v19 }
 0x73f   :  { %v964_v51 = vmul.f32 0.25, %v962_v47  ;;  %v980_v52 = vadd.f32 %v979_v48, %v978_v22 }
 0x740   :  { %v981_v53 = vmul.f32 0.25, %v973_v50  ;;  %v983_v54 = vmul.f32 %v963_v49, %v963_v49  ;;  %v987_v26 = vsub.f32 %v2355_v23, %v963_v49 }
 0x741   :  { %v982_v55 = vmul.f32 0.25, %v980_v52  ;;  %v984_v56 = vmul.f32 %v964_v51, %v964_v51  ;;  %v988_v29 = vsub.f32 %v2361_v27, %v964_v51 }
 0x742   :  { %v985_v57 = vsub.f32 %v981_v53, %v983_v54 }
 0x743   :  { %v986_v58 = vsub.f32 %v982_v55, %v984_v56 }
 0x744   :  { %v989_v60 = vadd.f32 1e-05, %v985_v57 }
 0x745   :  { %v990_v0 = vadd.f32 1e-05, %v986_v58 }
 0x746   :  { %1700 = vrsqrt.f32 %v989_v60 }
 0x747   :  { %1702 = vrsqrt.f32 %v990_v0 }
 0x750   :  { %v1701_v2 = vpop.eup %1700 }
 0x751   :  { %v1703_v4 = vpop.eup %1702 }
 0x752   :  { %v995_v6 = vcombine.low %v1701_v2, %v1703_v4 }
 0x754   :  { %v1002_v21 = vrot.slane %v995_v6, %v1001_v3 }
 0x756   :  { %v1004_v14 = vmul.f32 %v1002_v21, %v810_v8 }
 0x758   :  { %v1009_v17 = vrot.slane %v1004_v14, %v2297_v59  ;;  %v1013_v18 = vrot.slane %v1004_v14, %v1012_v9 }
 0x75a   :  { %v1023_v30 = vrot.slane %v1013_v18, %v2297_v59  ;;  %v1019_v31 = vrot.slane %v1009_v17, %v2297_v59 }
 0x75c   :  { %v1025_v44 = vmul.f32 %v1023_v30, %v988_v29  ;;  %v1024_v32 = vmul.f32 %v1019_v31, %v987_v26 }
 0x75e   :  { %v1046_v33 = vadd.f32 %v1044_v20, %v1025_v44  ;;  %v1045_v34 = vadd.f32 %v1040_v24, %v1024_v32 }
 0x760   :  { %v1048_v35 = vmax.f32 %v1046_v33, 0.0  ;;  %v1047_v36 = vmax.f32 %v1045_v34, 0.0 }
 0x762   :  { %v1082_v37 = vpack.c.bf16 %v1048_v35, %v1048_v35  ;;  %v1081_v38 = vpack.c.bf16 %v1047_v36, %v1047_v36 }
 0x764   :  { %1218 = vmatprep.mubr.bf16.mxu1 %v1082_v37 }
 0x765   :  { %1219 = vmatmul.mubr.bf16.vlgmr.msra.gmra.mrb[8].mxu1 %v1081_v38 }
 0x838   :  { %v1387_v39 = vpop.f32.mrb[8].mxu1 }
 0x839   :  { %v1388_v40 = vpop.f32.mrb[9].mxu1 }
 0x83a   :  { %v1389_v23 = vadd.f32 %v1388_v40, %v1387_v39  ;;  %v1390_v27 = vpop.f32.mrb[10].mxu1 }
 0x83b   :  { %v1391_v41 = vpop.f32.mrb[11].mxu1 }
 0x83c   :  { %v1221_v42 = vadd.f32 %v1389_v23, %v1283_v11 }
 0x83e   :  { %1226 = vst [vmem:[#allocation20] sm:$0xf] %v1221_v42 }
 0x83f   :  { %1957 = shalt.err (!%p1954_p8)
}
 0x840   :  { %s1958_s27 = scalar_lea.hbm %s2403_s11, 64 }
 0x841   :  { %p1959_p9 = scmp.ne.s32.totalorder %s2403_s11, %s1958_s27  ;;  %p1962_p10 = scmp.lt.u32.totalorder %s1958_s27, %s2403_s11 }
 0x843   :  { %p1964_p11 = pnand %p1962_p10, %p1959_p9 }
 0x845   :  { %1967 = shalt.err (!%p1964_p11)
}
 0x846   :  { %1236 = dma.vmem_to_hbm [thread:$0]  %s1234_s20, 64, %s2403_s11, [#allocation4]  }
 0x847   :  { %1980 = dma.done.wait [#allocation4], 64  }
 0x848   :  { %1981 = vsyncadd [#allocation4], 4294967232 }
 0x849   :  { %1240 = vsyncpa [#allocation3], 1 }
 0x84a   :  { %1241 = vsyncpa [#allocation6], 1 }
 0x84b   :  { %1242 = vsyncpa [#allocation9], 1 }
 0x84c   :  { %1243 = vsyncpa [#allocation12], 1 }
 0x84d   :  { %1244 = vsyncpa [#allocation15], 1 }
 0x84e   :  { %1245 = vsyncpa [#allocation18], 1 }
 0x84f   :  { %1246 = vsyncpa [#allocation4], 1 }

</bundles_post_ra>
